<compile_context>
chip_gen: v7x
topology: tpu7x:2x2x1
jax: 0.10.0
libtpu: 0.0.40
codegen_flags: <defaults>
</compile_context>

<pallas_src>
import functools

import jax
import jax.numpy as jnp
from jax import lax
from jax.experimental import pallas as pl
from jax.experimental.pallas import tpu as pltpu

LANES = 128
SUBLANES = 8
MAX_TILE_ROWS = 4096  # 4096 x 128 x f32 = 2 MiB per input buffer


def _cdiv(a, b):
    return -(-a // b)


def _round_up(a, b):
    return _cdiv(a, b) * b


def _focal_loss_kernel(pred_ref, true_ref, out_ref, *,
                       gamma, alpha, tile_rows, blocks_per_p, num_blocks,
                       last_full_rows, last_rem_lanes, need_mask, has_phantom):
    p = pl.program_id(0)
    j = pl.program_id(1)
    block_idx = p * blocks_per_p + j

    # (1, 8, 128) output block = per-parallel-slice partial-sum accumulator;
    # same block index for every j, so it stays resident across the reduction.
    @pl.when(j == 0)
    def _():
        out_ref[...] = jnp.zeros_like(out_ref)

    x = pred_ref[...].astype(jnp.float32)
    t = true_ref[...].astype(jnp.float32)

    # e = exp(-|x|) is shared between the stable BCE term and sigmoid.
    e = jnp.exp(-jnp.abs(x))
    # BCEWithLogitsLoss(reduction='none'): max(x,0) - x*t + log(1 + exp(-|x|))
    bce = jnp.maximum(x, 0.0) - x * t + jnp.log1p(e)

    inv = pl.reciprocal(1.0 + e, approx=True)        # EUP slot, not a VALU divide
    pred_prob = jnp.where(x >= 0.0, inv, e * inv)    # == sigmoid(x)

    # 1 - p_t == p + t - 2*p*t            (exact algebraic simplification)
    omp = pred_prob + t - 2.0 * (pred_prob * t)
    # t*alpha + (1-t)*(1-alpha) == (1-alpha) + (2*alpha-1)*t
    alpha_factor = (1.0 - alpha) + (2.0 * alpha - 1.0) * t

    if gamma == 1.5:
        modulating_factor = omp * jnp.sqrt(omp)      # (1-p_t)**1.5 without generic pow
    elif gamma == 2.0:
        modulating_factor = omp * omp
    elif gamma == 1.0:
        modulating_factor = omp
    elif gamma == 0.0:
        modulating_factor = jnp.ones_like(omp)
    else:
        modulating_factor = omp ** gamma
    loss = bce * alpha_factor * modulating_factor

    def _accumulate(vals):
        # Vreg-shaped accumulation: leading-axis sum only (pure VPU adds,
        # no cross-lane/sublane reduce per step).
        partial = vals.reshape(tile_rows // SUBLANES, SUBLANES, LANES).sum(axis=0)
        out_ref[...] += partial[None, :, :]

    if need_mask or has_phantom:
        @pl.when(block_idx == num_blocks - 1)
        def _():
            if need_mask:
                # Compile-time local row/lane thresholds; no flattened element
                # index (avoids int32 overflow on multi-billion-element inputs).
                row_ids = lax.broadcasted_iota(jnp.int32, (tile_rows, LANES), 0)
                if last_rem_lanes == 0:
                    valid = row_ids < last_full_rows
                else:
                    lane_ids = lax.broadcasted_iota(jnp.int32, (tile_rows, LANES), 1)
                    valid = (row_ids < last_full_rows) | (
                        (row_ids == last_full_rows) & (lane_ids < last_rem_lanes))
                _accumulate(jnp.where(valid, loss, 0.0))
            else:
                _accumulate(loss)

        @pl.when(block_idx < num_blocks - 1)
        def _():
            _accumulate(loss)
        # block_idx > num_blocks - 1: phantom megacore block, contributes nothing.
    else:
        _accumulate(loss)


def focal_loss(pred, true, gamma=1.5, alpha=0.25, reduction="mean"):
    """Focal loss over a BCE-with-logits base. pred/true: same shape (e.g. NCHW).

    Narrow dtypes (bf16 pred, bf16/int/bool true) may be passed directly; the
    kernel upcasts in VMEM, so do NOT pre-cast in the caller.
    """
    assert pred.shape == true.shape
    total = int(pred.size)
    rem_lanes = total % LANES
    rows = _cdiv(total, LANES)

    pred_flat = pred.reshape(-1)
    true_flat = true.reshape(-1)
    if rem_lanes != 0:
        # Rare path: element count not a multiple of 128 needs a <=127-element
        # lane pad so the (rows, 128) reshape is legal (this is a copy; the
        # common multiple-of-128 case is copy-free).
        pad = LANES - rem_lanes
        pred_flat = jnp.pad(pred_flat, (0, pad))
        true_flat = jnp.pad(true_flat, (0, pad))
    pred2d = pred_flat.reshape(rows, LANES)
    true2d = true_flat.reshape(rows, LANES)

    # Tile choice: biggest lane-dense row tile up to MAX_TILE_ROWS, but aim for
    # >= 2 blocks so the leading "parallel" axis can occupy both v7x TensorCores
    # (a harmless extra grid step on single-core v5e/v6e).
    rows8 = _round_up(rows, SUBLANES)
    if rows8 > SUBLANES:
        tile_rows = min(MAX_TILE_ROWS, _round_up(_cdiv(rows8, 2), SUBLANES))
    else:
        tile_rows = rows8
    num_blocks = _cdiv(rows, tile_rows)
    num_parallel = 2 if num_blocks >= 2 else 1
    blocks_per_p = _cdiv(num_blocks, num_parallel)
    has_phantom = num_parallel * blocks_per_p > num_blocks
    need_mask = (num_blocks * tile_rows != rows) or (rem_lanes != 0)
    last_full_rows = (total // LANES) - (num_blocks - 1) * tile_rows

    if has_phantom:
        def in_map(p, j, _bpp=blocks_per_p, _nb=num_blocks):
            # Clamp the single phantom grid point onto the last real block;
            # the kernel skips its accumulation.
            return (jnp.minimum(p * _bpp + j, _nb - 1), 0)
    else:
        def in_map(p, j, _bpp=blocks_per_p):
            return (p * _bpp + j, 0)

    kernel = functools.partial(
        _focal_loss_kernel,
        gamma=float(gamma), alpha=float(alpha),
        tile_rows=tile_rows, blocks_per_p=blocks_per_p, num_blocks=num_blocks,
        last_full_rows=last_full_rows, last_rem_lanes=rem_lanes,
        need_mask=need_mask, has_phantom=has_phantom,
    )

    cost = pl.CostEstimate(
        flops=18 * total,
        transcendentals=4 * total,
        bytes_accessed=int(pred2d.nbytes) + int(true2d.nbytes)
        + 4 * num_parallel * SUBLANES * LANES,
    )

    partials = pl.pallas_call(
        kernel,
        out_shape=jax.ShapeDtypeStruct((num_parallel, SUBLANES, LANES), jnp.float32),
        grid_spec=pltpu.PrefetchScalarGridSpec(
            num_scalar_prefetch=0,
            grid=(num_parallel, blocks_per_p),
            in_specs=[
                pl.BlockSpec((tile_rows, LANES), in_map),
                pl.BlockSpec((tile_rows, LANES), in_map),
            ],
            out_specs=pl.BlockSpec((1, SUBLANES, LANES), lambda p, j: (p, 0, 0)),
        ),
        compiler_params=pltpu.CompilerParams(
            dimension_semantics=("parallel", "arbitrary"),
            vmem_limit_bytes=48 * 1024 * 1024,
        ),
        cost_estimate=cost,
    )(pred2d, true2d)

    total_sum = jnp.sum(partials)  # tiny (P,8,128) cross-lane reduce in plain JAX
    if reduction == "mean":
        return total_sum / total
    elif reduction == "sum":
        return total_sum
    else:
        # TODO(synk): reduction='none' (elementwise output) not implemented here.
        raise NotImplementedError("reduction='none' not supported by this kernel")


def _focal_loss_ref(pred, true, gamma=1.5, alpha=0.25):
    x, t = pred.astype(jnp.float32), true.astype(jnp.float32)
    bce = jnp.maximum(x, 0.0) - x * t + jnp.log1p(jnp.exp(-jnp.abs(x)))
    p = jax.nn.sigmoid(x)
    p_t = t * p + (1 - t) * (1 - p)
    af = t * alpha + (1 - t) * (1 - alpha)
    mf = (1.0 - p_t) ** gamma
    return jnp.mean(bce * af * mf)


if __name__ == "__main__":
    key = jax.random.PRNGKey(0)
    k1, k2, k3, k4 = jax.random.split(key, 4)

    # Small NCHW shapes consistent with a detection-style loss input.
    pred = jax.random.normal(k1, (2, 4, 16, 16), dtype=jnp.float32)
    true = (jax.random.uniform(k2, (2, 4, 16, 16)) > 0.5).astype(jnp.float32)

    loss = focal_loss(pred, true, gamma=1.5, alpha=0.25)
    jax.block_until_ready(loss)
    ref = _focal_loss_ref(pred, true, gamma=1.5, alpha=0.25)
    # Tolerance accounts for the approximate (EUP) reciprocal in sigmoid.
    assert jnp.allclose(loss, ref, rtol=2e-3, atol=1e-5), (loss, ref)

    # Second check: ragged size (not a multiple of 128) to exercise the
    # rare lane-pad path and the last-block row/lane mask.
    pred_b = jax.random.normal(k3, (3, 5, 7, 11), dtype=jnp.float32)
    true_b = (jax.random.uniform(k4, (3, 5, 7, 11)) > 0.5).astype(jnp.float32)
    loss_b = focal_loss(pred_b, true_b, gamma=1.5, alpha=0.25)
    jax.block_until_ready(loss_b)
    ref_b = _focal_loss_ref(pred_b, true_b, gamma=1.5, alpha=0.25)
    assert jnp.allclose(loss_b, ref_b, rtol=2e-3, atol=1e-5), (loss_b, ref_b)

    print("KERNEL_OK")
</pallas_src>

<mosaic_0001>
module attributes {stable_mosaic.version = 11 : i64} {
  func.func @_focal_loss_kernel(%arg0: i32, %arg1: i32, %arg2: memref<8x128xf32, #tpu.memory_space<vmem>>, %arg3: memref<8x128xf32, #tpu.memory_space<vmem>>, %arg4: memref<1x8x128xf32, #tpu.memory_space<vmem>>) attributes {dimension_semantics = [#tpu.dimension_semantics<parallel>, #tpu.dimension_semantics<arbitrary>], iteration_bounds = array<i64: 2, 1>, scalar_prefetch = 0 : i64, scratch_operands = 0 : i64, tpu.core_type = #tpu.core_type<tc>, window_params = [{transform_indices = @transform_0, window_bounds = array<i64: 8, 128>}, {transform_indices = @transform_1, window_bounds = array<i64: 8, 128>}, {transform_indices = @transform_2, window_bounds = array<i64: 1, 8, 128>}]} {
    %c0_i32 = arith.constant 0 : i32
    %0 = arith.cmpi eq, %arg1, %c0_i32 : i32
    %1 = arith.extui %0 : i1 to i32
    %c0_i32_0 = arith.constant 0 : i32
    %2 = arith.cmpi ne, %1, %c0_i32_0 : i32
    scf.if %2 {
      %cst_17 = arith.constant 0.000000e+00 : f32
      %41 = vector.broadcast %cst_17 : f32 to vector<1x8x128xf32>
      %c0_18 = arith.constant 0 : index
      %c0_19 = arith.constant 0 : index
      %c0_20 = arith.constant 0 : index
      %42 = vector.load %arg4[%c0_18, %c0_19, %c0_20] : memref<1x8x128xf32, #tpu.memory_space<vmem>>, vector<1x8x128xf32>
      tpu.vector_store %arg4[%c0_18, %c0_19, %c0_20], %41 {strides = array<i32>} : memref<1x8x128xf32, #tpu.memory_space<vmem>>, vector<1x8x128xf32>,
    } else {
    }
    %c0 = arith.constant 0 : index
    %c0_1 = arith.constant 0 : index
    %3 = vector.load %arg2[%c0, %c0_1] : memref<8x128xf32, #tpu.memory_space<vmem>>, vector<8x128xf32>
    %c0_2 = arith.constant 0 : index
    %c0_3 = arith.constant 0 : index
    %4 = vector.load %arg3[%c0_2, %c0_3] : memref<8x128xf32, #tpu.memory_space<vmem>>, vector<8x128xf32>
    %5 = math.absf %3 : vector<8x128xf32>
    %cst = arith.constant 0.000000e+00 : f32
    %6 = vector.broadcast %cst : f32 to vector<8x128xf32>
    %7 = arith.subf %6, %5 : vector<8x128xf32>
    %8 = math.exp %7 : vector<8x128xf32>
    %cst_4 = arith.constant 0.000000e+00 : f32
    %9 = vector.broadcast %cst_4 : f32 to vector<8x128xf32>
    %10 = arith.maximumf %3, %9 : vector<8x128xf32>
    %11 = arith.mulf %3, %4 : vector<8x128xf32>
    %12 = arith.subf %10, %11 : vector<8x128xf32>
    %13 = math.log1p %8 : vector<8x128xf32>
    %14 = arith.addf %12, %13 : vector<8x128xf32>
    %cst_5 = arith.constant 1.000000e+00 : f32
    %15 = vector.broadcast %cst_5 : f32 to vector<8x128xf32>
    %16 = arith.addf %15, %8 : vector<8x128xf32>
    %17 = tpu.reciprocal %16 {approx = true} : vector<8x128xf32> -> vector<8x128xf32>
    %cst_6 = arith.constant 0.000000e+00 : f32
    %18 = vector.broadcast %cst_6 : f32 to vector<8x128xf32>
    %19 = arith.cmpf oge, %3, %18 : vector<8x128xf32>
    %20 = arith.mulf %8, %17 : vector<8x128xf32>
    %21 = arith.select %19, %17, %20 : vector<8x128xi1>, vector<8x128xf32>
    %22 = arith.addf %21, %4 : vector<8x128xf32>
    %23 = arith.mulf %21, %4 : vector<8x128xf32>
    %cst_7 = arith.constant 2.000000e+00 : f32
    %24 = vector.broadcast %cst_7 : f32 to vector<8x128xf32>
    %25 = arith.mulf %24, %23 : vector<8x128xf32>
    %26 = arith.subf %22, %25 : vector<8x128xf32>
    %cst_8 = arith.constant -5.000000e-01 : f32
    %27 = vector.broadcast %cst_8 : f32 to vector<8x128xf32>
    %28 = arith.mulf %27, %4 : vector<8x128xf32>
    %cst_9 = arith.constant 7.500000e-01 : f32
    %29 = vector.broadcast %cst_9 : f32 to vector<8x128xf32>
    %30 = arith.addf %29, %28 : vector<8x128xf32>
    %31 = math.sqrt %26 : vector<8x128xf32>
    %32 = arith.mulf %26, %31 : vector<8x128xf32>
    %33 = arith.mulf %14, %30 : vector<8x128xf32>
    %34 = arith.mulf %33, %32 : vector<8x128xf32>
    %35 = vector.shape_cast %34 : vector<8x128xf32> to vector<1x8x128xf32>
    %cst_10 = arith.constant dense<0.000000e+00> : vector<8x128xf32>
    %36 = vector.multi_reduction <add>, %35, %cst_10 [0] : vector<1x8x128xf32> to vector<8x128xf32>
    %c0_11 = arith.constant 0 : index
    %c0_12 = arith.constant 0 : index
    %c0_13 = arith.constant 0 : index
    %37 = vector.load %arg4[%c0_11, %c0_12, %c0_13] : memref<1x8x128xf32, #tpu.memory_space<vmem>>, vector<1x8x128xf32>
    %38 = vector.shape_cast %36 : vector<8x128xf32> to vector<1x8x128xf32>
    %39 = arith.addf %37, %38 : vector<1x8x128xf32>
    %c0_14 = arith.constant 0 : index
    %c0_15 = arith.constant 0 : index
    %c0_16 = arith.constant 0 : index
    %40 = vector.load %arg4[%c0_14, %c0_15, %c0_16] : memref<1x8x128xf32, #tpu.memory_space<vmem>>, vector<1x8x128xf32>
    tpu.vector_store %arg4[%c0_14, %c0_15, %c0_16], %39 {strides = array<i32>} : memref<1x8x128xf32, #tpu.memory_space<vmem>>, vector<1x8x128xf32>,
    return
  }
  func.func @transform_0(%arg0: i32, %arg1: i32) -> (i32, i32) {
    %c1_i32 = arith.constant 1 : i32
    %0 = arith.muli %arg0, %c1_i32 : i32
    %1 = arith.addi %0, %arg1 : i32
    %c0_i32 = arith.constant 0 : i32
    %c0_i32_0 = arith.constant 0 : i32
    return %1, %c0_i32 : i32, i32
  }
  func.func @transform_1(%arg0: i32, %arg1: i32) -> (i32, i32) {
    %c1_i32 = arith.constant 1 : i32
    %0 = arith.muli %arg0, %c1_i32 : i32
    %1 = arith.addi %0, %arg1 : i32
    %c0_i32 = arith.constant 0 : i32
    %c0_i32_0 = arith.constant 0 : i32
    return %1, %c0_i32 : i32, i32
  }
  func.func @transform_2(%arg0: i32, %arg1: i32) -> (i32, i32, i32) {
    %c0_i32 = arith.constant 0 : i32
    %c0_i32_0 = arith.constant 0 : i32
    %c0_i32_1 = arith.constant 0 : i32
    return %arg0, %c0_i32, %c0_i32_0 : i32, i32, i32
  }
}

</mosaic_0001>

<bundles_post_ra>
// kernel: tpu_custom_call.1
= control target key start
LH: loop header
LB: loop body
LE: loop exit
PB: predicated region body
PF: predicated region fallthrough
CT: control target
= control target key end

     0   :  { %7 = vsyncpa [#allocation3], 0  ;;  %s865_s0 = inlined_call_operand.hbm [shape: f32[16,128], index: 0, kind: input, shape index: {}]   ;;  %s866_s1 = inlined_call_operand.hbm [shape: f32[16,128], index: 1, kind: input, shape index: {}]   ;;  %s867_s2 = inlined_call_operand.hbm [shape: f32[2,8,128], index: 2, kind: output, shape index: {}]  }
   0x1   :  { %9 = vsyncpa [#allocation3 + $0x1], 0 }
   0x2   :  { %10 = vsyncpa [#allocation6], 0 }
   0x3   :  { %12 = vsyncpa [#allocation6 + $0x1], 0 }
   0x4   :  { %13 = vsyncpa [#allocation4], 0 }
   0x5   :  { %15 = vsyncpa [#allocation4 + $0x1], 0  ;;  %s640_s9 = smov 0   ;;  %s642_s10 = smov 0  }
   0x6   :  { %s644_s11 = smov 0   ;;  %s646_s12 = smov 0  }
   0x7   :  { %s648_s13 = smov 0   ;;  %s650_s14 = smov 0  }
   0x8 LB: > { %s382_s15 = sadd.s32 4294967295, %s620_s14   ;;  %s383_s16 = sadd.s32 4294967294, %s620_s14   ;;  %s620_s14 = sphi %s650_s14, %s21_s14   ;;  %s616_s13 = sphi %s648_s13, %s887_s13   ;;  %s612_s12 = sphi %s646_s12, %s886_s12   ;;  %s608_s11 = sphi %s644_s11, %s885_s11   ;;  %s604_s10 = sphi %s642_s10, %s884_s10   ;;  %s600_s9 = sphi %s640_s9, %s883_s9  }
   0x9   : > { %s33_s17 = sadd.s32 1, %s616_s13  ;;  %s42_s18 = sadd.s32 1, %s608_s11 }
   0xa   : > { %p35_p0 = scmp.ge.s32.totalorder %s33_s17, 2  ;;  %p49_p1 = scmp.ne.s32.totalorder %s608_s11, %s604_s10 }
   0xb   : > { %p50_p2 = scmp.eq.s32.totalorder %s620_s14, 0  ;;  %p55_p3 = scmp.ne.s32.totalorder %s604_s10, %s600_s9 }
   0xc   : > { %s889_s17 = smov (%p35_p0, %s33_s17), 0  ;;  %p56_p5 = scmp.eq.s32.totalorder %s382_s15, 0 }
   0xd   : > { %p681_p4 = por %p50_p2, %p49_p1  ;;  %s39_s20 = ssub.s32 %s616_s13, %s889_s17 }
   0xe   : > { %p107_p6 = scmp.eq.s32.totalorder %s382_s15, 1  ;;  %p40_p7 = scmp.eq.s32.totalorder %s39_s20, 0 }
   0xf   : > { %p687_p8 = por %p56_p5, %p55_p3  ;;  %p113_p10 = scmp.eq.s32.totalorder %s383_s16, 1 }
  0x10   : > { %p691_p9 = por %p107_p6, %p49_p1  ;;  %p415_p13 = scmp.lt.s32.totalorder %s620_s14, 2 }
  0x11   : > { %s871_s21 = scalar_select %p687_p8, 1, 0 }
  0x12   : > { %s872_s22 = scalar_select %p691_p9, 1, 0 }
  0x13   : > { %s696_s23 = scalar_select %p40_p7, %s608_s11, %s42_s18  }
  0x14   : > { %p698_p11 = por %p113_p10, %p55_p3  ;;  %s705_s25 = sand.u32 1, %s608_s11  }
  0x15   : > { %s386_s26 = sshll.u32 %s705_s25, 3  ;;  %s387_s27 = sshll.u32 %s616_s13, 7 }
  0x16   : > { %s873_s24 = scalar_select %p698_p11, 1, 0 }
  0x17   : > { %s714_s30 = scalar_lea.hbm %s865_s0, %s387_s27  ;;  %s137_s3 = scalar_lea.vmem [#allocation2], %s386_s26 }
  0x18   : > { %s145_s4 = sshll.u32 %s137_s3, 4  ;;  %p722_p0 = pnand %p415_p13, %p681_p4  ;;  %s718_s4 = int_to_ptr.vmem [resolvable:$true] %s145_s4 }
  0x19   : > { %s134_s6 = scalar_lea.sflag [#allocation3], %s705_s25  ;;  %s474_s7 = scalar_lea.hbm %s714_s30, 128 }
  0x1a   : > { %p475_p3 = scmp.ne.s32.totalorder %s714_s30, %s474_s7  ;;  %p476_p5 = pneg %p722_p0 }
  0x1b   : > { %s479_s16 = scalar_lea.hbm %s865_s0, 256  ;;  %p480_p4 = scmp.lt.u32.totalorder %s714_s30, %s865_s0 }
  0x1c   : > { %p477_p6 = pnand %p476_p5, %p475_p3  ;;  %p481_p10 = scmp.lt.u32.totalorder %s479_s16, %s474_s7 }
  0x1d   : > { %p483_p12 = scmp.lt.u32.totalorder %s474_s7, %s714_s30 }
  0x1e   : > { %p478_p7 = pneg %p477_p6  ;;  %p482_p13 = por %p481_p10, %p480_p4 }
  0x20   : > { %p484_p1 = por %p483_p12, %p482_p13 }
  0x22   : > { %p485_p2 = pnand %p484_p1, %p478_p7 }
  0x24   : > { %488 = shalt.err (!%p485_p2)
}
  0x25   : > { %s489_s20 = scalar_lea.vmem %s718_s4, 128  ;;  %s622_s28 = smov [#allocation2]  }
  0x26   : > { %p490_p3 = scmp.ne.s32.totalorder %s718_s4, %s489_s20  ;;  %s494_s29 = sshll.u32 %s622_s28, 4  ;;  %s495_s29 = int_to_ptr.vmem [resolvable:$false] %s494_s29 }
  0x27   : > { %s496_s3 = scalar_lea.vmem %s495_s29, 256  ;;  %p497_p9 = scmp.lt.s32.totalorder %s718_s4, %s495_s29 }
  0x28   : > { %p492_p6 = pnand %p490_p3, %p476_p5  ;;  %p498_p4 = scmp.lt.s32.totalorder %s496_s3, %s489_s20 }
  0x2a   : > { %p493_p11 = pneg %p492_p6  ;;  %p499_p10 = por %p498_p4, %p497_p9 }
  0x2c   : > { %p500_p12 = pnand %p499_p10, %p493_p11 }
  0x2e   : > { %503 = shalt.err (!%p500_p12)
}
  0x2f   : > { %407 = dma.hbm_to_vmem [thread:$0]  (!%p722_p0), %s714_s30, 128, %s718_s4, %s134_s6  }
  0x30   : > { %p875_p1 = scmp.lt.s32.totalorder %s620_s14, 3  ;;  %p876_p2 = scmp.ge.s32.totalorder %s620_s14, 1 }
  0x31   : > { %s767_s16 = scalar_lea.hbm %s866_s1, %s387_s27  ;;  %s156_s18 = scalar_lea.vmem [#allocation5], %s386_s26 }
  0x32   : > { %p758_p7 = pnand %p876_p2, %p875_p1  ;;  %s164_s19 = sshll.u32 %s156_s18, 4  ;;  %s165_s19 = int_to_ptr.vmem [resolvable:$true] %s164_s19 }
  0x33   : > { %s153_s30 = scalar_lea.sflag [#allocation6], %s705_s25  ;;  %s504_s4 = scalar_lea.hbm %s767_s16, 128 }
  0x34   : > { %s877_s7 = scalar_select %p758_p7, 1, 0 }
  0x35   : > { %p505_p9 = scmp.ne.s32.totalorder %s767_s16, %s504_s4  ;;  %s509_s27 = scalar_lea.hbm %s866_s1, 256 }
  0x36   : > { %p510_p3 = scmp.lt.u32.totalorder %s767_s16, %s866_s1  ;;  %p511_p6 = scmp.lt.u32.totalorder %s509_s27, %s504_s4 }
  0x37   : > { %p507_p11 = pnand %p505_p9, %p476_p5  ;;  %p513_p10 = scmp.lt.u32.totalorder %s504_s4, %s767_s16 }
  0x38   : > { %p512_p4 = por %p511_p6, %p510_p3 }
  0x39   : > { %p508_p13 = pneg %p507_p11 }
  0x3a   : > { %p514_p12 = por %p513_p10, %p512_p4 }
  0x3c   : > { %p515_p1 = pnand %p514_p12, %p508_p13 }
  0x3e   : > { %518 = shalt.err (!%p515_p1)
}
  0x3f   : > { %s519_s25 = scalar_lea.vmem %s165_s19, 128  ;;  %s623_s26 = smov [#allocation5]  }
  0x40   : > { %p520_p2 = scmp.ne.s32.totalorder %s165_s19, %s519_s25  ;;  %s524_s3 = sshll.u32 %s623_s26, 4  ;;  %s525_s3 = int_to_ptr.vmem [resolvable:$false] %s524_s3 }
  0x41   : > { %s526_s8 = scalar_lea.vmem %s525_s3, 256  ;;  %p527_p8 = scmp.lt.s32.totalorder %s165_s19, %s525_s3 }
  0x42   : > { %p522_p9 = pnand %p520_p2, %p476_p5  ;;  %p528_p7 = scmp.lt.s32.totalorder %s526_s8, %s519_s25 }
  0x44   : > { %p523_p11 = pneg %p522_p9  ;;  %p529_p3 = por %p528_p7, %p527_p8 }
  0x46   : > { %p530_p6 = pnand %p529_p3, %p523_p11 }
  0x48   : > { %533 = shalt.err (!%p530_p6)
}
  0x49   : > { %410 = dma.hbm_to_vmem [thread:$0]  (!%p722_p0), %s767_s16, 128, %s165_s19, %s153_s30  }
  0x4a   : > { %p878_p13 = scmp.ne.s32.totalorder %s877_s7, 0 }
  0x4b   : > { %s794_s15 = sand.u32 (!%p878_p13), 1, %s604_s10   ;;  %p879_p8 = scmp.ne.s32.totalorder (!%p878_p13), %s871_s21, 0 }
  0x4c   : > { %173 = sbr.rel (%p878_p13) target bundleno = 159 (0x9f), region = 28  ;;  %s797_s18 = sshll.u32 (!%p878_p13), %s794_s15, 3 }
  0x4d   : > { %s176_s4 = scalar_lea.sflag (!%p878_p13), [#allocation3], %s794_s15  ;;  %s179_s6 = scalar_lea.vmem (!%p878_p13), [#allocation2], %s797_s18 }
  0x53   : > { %587 = dma.done.wait (%p879_p8), %s176_s4, 128  }
  0x54   : > { %589 = vsyncadd (%p879_p8), %s176_s4, 4294967168  ;;  %s185_s5 = scalar_lea.sflag [#allocation6], %s794_s15  ;;  %s188_s7 = scalar_lea.vmem [#allocation5], %s797_s18 }
  0x55   : > { %591 = dma.done.wait (%p879_p8), %s185_s5, 128  }
  0x56   : > { %593 = vsyncadd (%p879_p8), %s185_s5, 4294967168  ;;  %v221_v0 = vld [vmem:[%s179_s6] sm:$0xff]  ;;  %v222_v7 = vld [vmem:[%s188_s7] sm:$0xff]  ;;  %s395_s21 = sshll.u32 %s612_s12, 7  ;;  %s213_s16 = scalar_lea.vmem [#allocation7], %s797_s18 }
  0x57   : > { %v223_v1 = vand.u32 2147483647, %v221_v0  ;;  %vm242_vm0 = vcmp.ge.f32.partialorder %v221_v0, 0.0  ;;  %v227_v18 = vmax.f32 %v221_v0, 0.0  ;;  %v228_v19 = vmul.f32 %v222_v7, %v221_v0  ;;  %s279_s19 = sshll.u32 %s213_s16, 4  ;;  %s816_s27 = scalar_lea.hbm %s867_s2, %s395_s21  ;;  %s818_s19 = int_to_ptr.vmem [resolvable:$true] %s279_s19 }
  0x58   : > { %v249_v23 = vmul.f32 -0.5, %v222_v7  ;;  %s266_s28 = scalar_lea.sflag [#allocation4], %s794_s15  ;;  %s534_s29 = scalar_lea.vmem %s818_s19, 128 }
  0x59   : > { %v224_v2 = vsub.f32 0.0, %v223_v1  ;;  %v229_v22 = vsub.f32 %v227_v18, %v228_v19  ;;  %p535_p0 = scmp.ne.s32.totalorder %s818_s19, %s534_s29  ;;  %p880_p5 = scmp.ne.s32.totalorder %s872_s22, 0 }
  0x5a   : > { %v250_v26 = vadd.f32 0.75, %v249_v23  ;;  %s624_s12 = smov [#allocation7]  }
  0x5b   : > { %v225_v3 = vmul.f32 1.442695, %v224_v2  ;;  %p536_p7 = pnand %p535_p0, %p880_p5  ;;  %s538_s25 = sshll.u32 %s624_s12, 4  ;;  %s539_s25 = int_to_ptr.vmem [resolvable:$false] %s538_s25 }
  0x5c   : > { %s540_s26 = scalar_lea.vmem %s539_s25, 256  ;;  %p541_p10 = scmp.lt.s32.totalorder %s818_s19, %s539_s25 }
  0x5d   : > { %466 = vpow2.f32 %v225_v3  ;;  %p537_p4 = pneg %p536_p7  ;;  %p542_p12 = scmp.lt.s32.totalorder %s540_s26, %s534_s29 }
  0x5f   : > { %p543_p1 = por %p542_p12, %p541_p10 }
  0x61   : > { %p544_p2 = pnand %p543_p1, %p537_p4 }
  0x67   : > { %v467_v4 = vpop.eup %466 }
  0x68   : > { %v230_v5 = vadd.f32 1.0, %v467_v4  ;;  %v233_v10 = vmul.f32 -0.5, %v467_v4  ;;  %v236_v17 = vand.u32 2147483647, %v467_v4 }
  0x6a   : > { %468 = vrcp.f32 %v230_v5  ;;  %v234_v14 = vadd.f32 1.0, %v233_v10  ;;  %vm237_vm1 = vcmp.lt.f32.partialorder %v236_v17, 0.0004427343 }
  0x6b   : > { %470 = vlog2.f32 %v230_v5 }
  0x6c   : > { %v235_v21 = vmul.f32 %v467_v4, %v234_v14 }
  0x74   : > { %v469_v6 = vpop.eup %468 }
  0x75   : > { %v243_v8 = vmul.f32 %v469_v6, %v467_v4  ;;  %v471_v16 = vpop.eup %470 }
  0x76   : > { %v232_v20 = vmul.f32 0.6931472, %v471_v16 }
  0x77   : > { %v244_v9 = vsel %vm242_vm0, %v469_v6, %v243_v8 }
  0x78   : > { %v245_v11 = vadd.f32 %v244_v9, %v222_v7  ;;  %v246_v12 = vmul.f32 %v244_v9, %v222_v7  ;;  %v238_v24 = vsel %vm237_vm1, %v235_v21, %v232_v20 }
  0x79   : > { %v239_v25 = vadd.f32 %v238_v24, %v229_v22 }
  0x7a   : > { %v247_v13 = vmul.f32 2.0, %v246_v12 }
  0x7b   : > { %v259_v31 = vmul.f32 %v250_v26, %v239_v25 }
  0x7c   : > { %v248_v15 = vsub.f32 %v245_v11, %v247_v13 }
  0x7e   : > { %472 = vrsqrt.f32 %v248_v15  ;;  %vm253_vm2 = vcmp.eq.f32.partialorder %v248_v15, inf  ;;  %v256_v28 = vand.u32 2147483648, %v248_v15  ;;  %vm255_vm3 = vcmp.eq.f32.partialorder %v248_v15, 0.0 }
  0x88   : > { %v473_v27 = vpop.eup %472 }
  0x89   : > { %v252_v29 = vmul.f32 %v473_v27, %v248_v15 }
  0x8b   : > { %v254_v30 = vsel %vm253_vm2, %v248_v15, %v252_v29 }
  0x8c   : > { %v257_v32 = vsel %vm255_vm3, %v256_v28, %v254_v30 }
  0x8d   : > { %v258_v33 = vmul.f32 %v257_v32, %v248_v15 }
  0x8f   : > { %v260_v34 = vmul.f32 %v259_v31, %v258_v33 }
  0x91   : > { %264 = vst [vmem:[%s213_s16] sm:$0xff] %v260_v34 }
  0x92   : > { %547 = shalt.err (!%p544_p2)
}
  0x93   : > { %s548_s3 = scalar_lea.hbm %s816_s27, 128  ;;  %s552_s18 = scalar_lea.hbm %s867_s2, 256 }
  0x94   : > { %p549_p9 = scmp.ne.s32.totalorder %s816_s27, %s548_s3  ;;  %p553_p6 = scmp.lt.u32.totalorder %s816_s27, %s867_s2 }
  0x95   : > { %p554_p13 = scmp.lt.u32.totalorder %s552_s18, %s548_s3  ;;  %p556_p0 = scmp.lt.u32.totalorder %s548_s3, %s816_s27 }
  0x96   : > { %p550_p11 = pnand %p549_p9, %p880_p5 }
  0x97   : > { %p555_p8 = por %p554_p13, %p553_p6 }
  0x98   : > { %p551_p3 = pneg %p550_p11 }
  0x99   : > { %p557_p7 = por %p556_p0, %p555_p8 }
  0x9b   : > { %p558_p4 = pnand %p557_p7, %p551_p3 }
  0x9d   : > { %561 = shalt.err (!%p558_p4)
}
  0x9e   : > { %402 = dma.vmem_to_hbm [thread:$0]  (%p880_p5), %s818_s19, 128, %s816_s27, %s266_s28  }
  0x9f PF: > { %s291_s5 = sand.u32 1, %s600_s9   ;;  %p881_p10 = scmp.ne.s32.totalorder %s873_s24, 0 }
  0xa0   : > { %p882_p12 = scmp.ge.s32.totalorder %s620_s14, 2  ;;  %s292_s7 = scalar_lea.sflag [#allocation4], %s291_s5 }
  0xa2   : > { %p412_p1 = pnand %p882_p12, %p881_p10 }
  0xa4   : > { %595 = dma.done.wait (!%p412_p1), %s292_s7, 128  }
  0xa5   : > { %597 = vsyncadd (!%p412_p1), %s292_s7, 4294967168  ;;  %s21_s14 = sadd.s32 1, %s620_s14   ;;  %s883_s9 = smov %s604_s10 }
  0xa6   : > { %p18_p2 = scmp.ge.s32.totalorder %s21_s14, 4   ;;  %s884_s10 = smov %s608_s11 }
  0xa7   : > { %s885_s11 = smov %s696_s23  ;;  %s886_s12 = smov %s616_s13 }
  0xa8   : > { %s887_s13 = smov %s889_s17  ;;  %20 = sbr.rel (!%p18_p2) target bundleno = 8 (0x8), region = 90 }
  0xaf   :  { %297 = vsyncpa [#allocation3], 1 }
  0xb0   :  { %299 = vsyncpa [#allocation3 + $0x1], 1 }
  0xb1   :  { %300 = vsyncpa [#allocation6], 1 }
  0xb2   :  { %302 = vsyncpa [#allocation6 + $0x1], 1 }
  0xb3   :  { %303 = vsyncpa [#allocation4], 1 }
  0xb4   :  { %305 = vsyncpa [#allocation4 + $0x1], 1 }

</bundles_post_ra>
